<compile_context>
chip_gen: v5e
topology: v5e:2x2
jax: 0.10.0
libtpu: 0.0.40
codegen_flags: <defaults>
</compile_context>

<pallas_src>
import math

import jax
import jax.numpy as jnp
from jax.experimental import pallas as pl
from jax.experimental.pallas import tpu as pltpu

B, S, H = 2, 8, 32
NUM_HEADS, HEAD_DIM = 2, 16
FFN = 64
VOCAB = 100
NUM_CLASSES = 6
LANE = 128            # lane-dense padding for the classifier output
CLS_TILE = 8          # min f32 sublane tile; row 0 of each tile is the CLS row
NEG_INF = -1e9

# Row indices of the packed (10, LANE) f32 bias / LayerNorm table.
(ROW_BQKV, ROW_BO, ROW_LN1G, ROW_LN1B, ROW_B1,
 ROW_B2, ROW_LN2G, ROW_LN2B, ROW_BP, ROW_BC) = range(10)
NUM_VEC_ROWS = 10


def _bf16_transcendentals():
    # v6e / v7x have bf16 VPU + EUP; v5e and older do not -> keep f32 there.
    try:
        kind = jax.devices()[0].device_kind.lower()
    except Exception:
        return False
    return ("v6" in kind) or ("v7" in kind)


BF16_EUP = _bf16_transcendentals()


def _layernorm(x, gamma, beta, eps=1e-12):
    mu = jnp.mean(x, axis=-1, keepdims=True)
    var = jnp.mean((x - mu) ** 2, axis=-1, keepdims=True)
    return (x - mu) * jax.lax.rsqrt(var + eps) * gamma + beta


def bert_classifier_kernel(
    vl_ref,     # SMEM (B,) int32   scalar-prefetched valid_length
    x_ref,      # (1, S, H)  f32    embeddings for batch element b
    wqkv_ref,   # (H, 3H)    bf16   fused QKV (1/sqrt(head_dim) folded into Q)
    wo_ref,     # (H, H)     bf16   attention output proj
    w1_ref,     # (H, FFN)   bf16
    w2_ref,     # (FFN, H)   bf16
    wp_ref,     # (H, H)     bf16   pooler
    wc_ref,     # (H, LANE)  bf16   classifier, lane-padded
    vecs_ref,   # (10, LANE) f32    packed biases / LN params
    out_ref,    # (1, CLS_TILE, LANE) f32  lane-dense logits (row 0 = CLS)
    ctx_ref,    # VMEM (S, H) f32   scratch: per-head context written in place
):
    b = pl.program_id(0)
    x = x_ref[0]                                       # (S, H) f32

    vecs = vecs_ref[...]                               # (10, LANE) f32
    b_qkv = vecs[ROW_BQKV:ROW_BQKV + 1, 0:3 * H]
    bo = vecs[ROW_BO:ROW_BO + 1, 0:H]
    ln1_g = vecs[ROW_LN1G:ROW_LN1G + 1, 0:H]
    ln1_b = vecs[ROW_LN1B:ROW_LN1B + 1, 0:H]
    b1 = vecs[ROW_B1:ROW_B1 + 1, 0:FFN]
    b2 = vecs[ROW_B2:ROW_B2 + 1, 0:H]
    ln2_g = vecs[ROW_LN2G:ROW_LN2G + 1, 0:H]
    ln2_b = vecs[ROW_LN2B:ROW_LN2B + 1, 0:H]
    bp = vecs[ROW_BP:ROW_BP + 1, 0:H]
    bc = vecs[ROW_BC:ROW_BC + 1, :]                    # (1, LANE)

    # ---- fused QKV projection (bf16 MXU, f32 accumulate) --------------------
    qkv = jnp.dot(x.astype(jnp.bfloat16), wqkv_ref[...],
                  preferred_element_type=jnp.float32) + b_qkv   # (S, 3H) f32
    q = qkv[:, 0:H]                  # already scaled by 1/sqrt(head_dim)
    k = qkv[:, H:2 * H]
    v = qkv[:, 2 * H:3 * H]

    # ---- attention mask built in-kernel from valid_length (VPU, no HBM) -----
    # gen_attention_mask semantics: keys at position < valid_length[b] attend.
    # TODO(synk): a row with valid_length == 0 would softmax over all -1e9.
    vl = vl_ref[b]
    key_pos = jax.lax.broadcasted_iota(jnp.int32, (S, S), 1)
    mask = jnp.where(key_pos < vl, 0.0, NEG_INF).astype(jnp.float32)

    # ---- self attention: per-head, no K transpose, no lane concat -----------
    for h in range(NUM_HEADS):                         # static unroll (2 heads)
        sl = slice(h * HEAD_DIM, (h + 1) * HEAD_DIM)
        qh = q[:, sl].astype(jnp.bfloat16)             # (S, HD)
        kh = k[:, sl].astype(jnp.bfloat16)             # (S, HD)
        vh = v[:, sl].astype(jnp.bfloat16)             # (S, HD)
        # Q @ K^T via dot_general contracting dim 1 of both (no materialized .T)
        s = jax.lax.dot_general(qh, kh, (((1,), (1,)), ((), ())),
                                preferred_element_type=jnp.float32) + mask
        s = s - jnp.max(s, axis=-1, keepdims=True)
        if BF16_EUP:
            p = jnp.exp(s.astype(jnp.bfloat16)).astype(jnp.float32)
        else:
            p = jnp.exp(s)
        p = p * pl.reciprocal(jnp.sum(p, axis=-1, keepdims=True), approx=True)
        # write this head's context into its lane slice of the VMEM scratch
        ctx_ref[:, sl] = jnp.dot(p.astype(jnp.bfloat16), vh,
                                 preferred_element_type=jnp.float32)

    ctx = ctx_ref[...]                                 # (S, H) f32
    attn = jnp.dot(ctx.astype(jnp.bfloat16), wo_ref[...],
                   preferred_element_type=jnp.float32) + bo

    h1 = _layernorm(x + attn, ln1_g, ln1_b)

    # ---- feed forward --------------------------------------------------------
    f = jnp.dot(h1.astype(jnp.bfloat16), w1_ref[...],
                preferred_element_type=jnp.float32) + b1
    if BF16_EUP:
        f_act = jax.nn.gelu(f.astype(jnp.bfloat16), approximate=True)
    else:
        f_act = jax.nn.gelu(f, approximate=True).astype(jnp.bfloat16)
    f = jnp.dot(f_act, w2_ref[...],
                preferred_element_type=jnp.float32) + b2
    h2 = _layernorm(h1 + f, ln2_g, ln2_b)

    # ---- pooler + classifier on the CLS tile only (8 rows = min f32 tile) ---
    h2_cls = h2[0:CLS_TILE, :]
    pooled = jnp.tanh(jnp.dot(h2_cls.astype(jnp.bfloat16), wp_ref[...],
                              preferred_element_type=jnp.float32) + bp)

    # dropout(dr_rate) == identity in eval mode.

    logits = jnp.dot(pooled.astype(jnp.bfloat16), wc_ref[...],
                     preferred_element_type=jnp.float32) + bc    # (8, LANE)
    out_ref[0] = logits


def pack_weights(params):
    """One-time packing of weights into kernel-ready (bf16 / lane-padded) form."""
    scale = 1.0 / math.sqrt(HEAD_DIM)
    w_qkv = jnp.concatenate(
        [params["wq"] * scale, params["wk"], params["wv"]],
        axis=1).astype(jnp.bfloat16)                                  # (H, 3H)

    wc_pad = jnp.zeros((H, LANE), jnp.float32).at[:, :NUM_CLASSES].set(
        params["wc"]).astype(jnp.bfloat16)                            # (H, LANE)

    def row(vec):
        vec = jnp.asarray(vec, jnp.float32).reshape(1, -1)
        return jnp.pad(vec, ((0, 0), (0, LANE - vec.shape[1])))

    vecs = jnp.concatenate([
        row(jnp.concatenate([params["bq"] * scale, params["bk"], params["bv"]],
                            axis=1)),
        row(params["bo"]),
        row(params["ln1_g"]), row(params["ln1_b"]),
        row(params["b1"]), row(params["b2"]),
        row(params["ln2_g"]), row(params["ln2_b"]),
        row(params["bp"]),
        row(params["bc"]),
    ], axis=0)                                                        # (10, LANE)

    return {
        "word_emb": params["word_emb"].astype(jnp.float32),
        "type_emb": params["type_emb"].astype(jnp.float32),
        "pos_emb": params["pos_emb"].astype(jnp.float32),
        "w_qkv": w_qkv,
        "wo": params["wo"].astype(jnp.bfloat16),
        "w1": params["w1"].astype(jnp.bfloat16),
        "w2": params["w2"].astype(jnp.bfloat16),
        "wp": params["wp"].astype(jnp.bfloat16),
        "wc": wc_pad,
        "vecs": vecs,
    }


@jax.jit
def bert_classifier_forward(token_ids, valid_length, segment_ids, packed):
    # Embedding lookups (gather) stay in plain JAX glue.
    x = (packed["word_emb"][token_ids]
         + packed["type_emb"][segment_ids]
         + packed["pos_emb"][None, :, :]).astype(jnp.float32)        # (B, S, H)

    grid_spec = pltpu.PrefetchScalarGridSpec(
        num_scalar_prefetch=1,                 # valid_length -> SMEM
        grid=(B,),
        in_specs=[
            pl.BlockSpec((1, S, H), lambda b, vl: (b, 0, 0)),        # x
            pl.BlockSpec((H, 3 * H), lambda b, vl: (0, 0)),          # w_qkv
            pl.BlockSpec((H, H), lambda b, vl: (0, 0)),              # wo
            pl.BlockSpec((H, FFN), lambda b, vl: (0, 0)),            # w1
            pl.BlockSpec((FFN, H), lambda b, vl: (0, 0)),            # w2
            pl.BlockSpec((H, H), lambda b, vl: (0, 0)),              # wp
            pl.BlockSpec((H, LANE), lambda b, vl: (0, 0)),           # wc
            pl.BlockSpec((NUM_VEC_ROWS, LANE), lambda b, vl: (0, 0)),  # vecs
        ],
        out_specs=pl.BlockSpec((1, CLS_TILE, LANE), lambda b, vl: (b, 0, 0)),
        scratch_shapes=[pltpu.VMEM((S, H), jnp.float32)],            # ctx scratch
    )

    out = pl.pallas_call(
        bert_classifier_kernel,
        out_shape=jax.ShapeDtypeStruct((B, CLS_TILE, LANE), jnp.float32),
        grid_spec=grid_spec,
        compiler_params=pltpu.CompilerParams(
            dimension_semantics=("parallel",)),
    )(valid_length.astype(jnp.int32), x,
      packed["w_qkv"], packed["wo"], packed["w1"], packed["w2"],
      packed["wp"], packed["wc"], packed["vecs"])

    # CLS row (row 0 of each batch tile) and the real classes only.
    return out[:, 0, :NUM_CLASSES]                                   # (B, C)


def init_params(key):
    ks = jax.random.split(key, 12)

    def n(k, shape, scale=0.02):
        return jax.random.normal(k, shape, jnp.float32) * scale

    return {
        "word_emb": n(ks[0], (VOCAB, H)),
        "type_emb": n(ks[1], (2, H)),
        "pos_emb":  n(ks[2], (S, H)),
        "wq": n(ks[3], (H, H)),  "bq": jnp.zeros((1, H), jnp.float32),
        "wk": n(ks[4], (H, H)),  "bk": jnp.zeros((1, H), jnp.float32),
        "wv": n(ks[5], (H, H)),  "bv": jnp.zeros((1, H), jnp.float32),
        "wo": n(ks[6], (H, H)),  "bo": jnp.zeros((1, H), jnp.float32),
        "ln1_g": jnp.ones((1, H), jnp.float32), "ln1_b": jnp.zeros((1, H), jnp.float32),
        "w1": n(ks[7], (H, FFN)), "b1": jnp.zeros((1, FFN), jnp.float32),
        "w2": n(ks[8], (FFN, H)), "b2": jnp.zeros((1, H), jnp.float32),
        "ln2_g": jnp.ones((1, H), jnp.float32), "ln2_b": jnp.zeros((1, H), jnp.float32),
        "wp": n(ks[9], (H, H)),  "bp": jnp.zeros((1, H), jnp.float32),
        "wc": n(ks[10], (H, NUM_CLASSES)), "bc": jnp.zeros((1, NUM_CLASSES), jnp.float32),
    }


if __name__ == "__main__":
    key = jax.random.PRNGKey(0)
    pkey, tkey = jax.random.split(key, 2)
    params = init_params(pkey)
    packed = pack_weights(params)        # one-time weight packing (hoisted)

    token_ids = jax.random.randint(tkey, (B, S), 0, VOCAB, dtype=jnp.int32)
    segment_ids = jnp.zeros((B, S), jnp.int32)
    valid_length = jnp.array([5, 8], jnp.int32)   # mask[i, :valid_length[i]] = 1

    logits = bert_classifier_forward(token_ids, valid_length, segment_ids, packed)
    jax.block_until_ready(logits)
    assert logits.shape == (B, NUM_CLASSES)
    assert bool(jnp.all(jnp.isfinite(logits)))
    print("KERNEL_OK")
</pallas_src>

<mosaic_0001>
module attributes {stable_mosaic.version = 11 : i64} {
  func.func @bert_classifier_kernel(%arg0: i32, %arg1: memref<2xi32, #tpu.memory_space<smem>>, %arg2: memref<1x8x32xf32, #tpu.memory_space<vmem>>, %arg3: memref<32x96xbf16, #tpu.memory_space<vmem>>, %arg4: memref<32x32xbf16, #tpu.memory_space<vmem>>, %arg5: memref<32x64xbf16, #tpu.memory_space<vmem>>, %arg6: memref<64x32xbf16, #tpu.memory_space<vmem>>, %arg7: memref<32x32xbf16, #tpu.memory_space<vmem>>, %arg8: memref<32x128xbf16, #tpu.memory_space<vmem>>, %arg9: memref<10x128xf32, #tpu.memory_space<vmem>>, %arg10: memref<1x8x128xf32, #tpu.memory_space<vmem>>, %arg11: memref<8x32xf32, #tpu.memory_space<vmem>>) attributes {dimension_semantics = [#tpu.dimension_semantics<parallel>], iteration_bounds = array<i64: 2>, scalar_prefetch = 1 : i64, scratch_operands = 1 : i64, tpu.core_type = #tpu.core_type<tc>, window_params = [{transform_indices = @transform_0, window_bounds = array<i64: 1, 8, 32>}, {pipeline_mode = #tpu.pipeline_mode<synchronous>, transform_indices = @transform_1, window_bounds = array<i64: 32, 96>}, {pipeline_mode = #tpu.pipeline_mode<synchronous>, transform_indices = @transform_2, window_bounds = array<i64: 32, 32>}, {pipeline_mode = #tpu.pipeline_mode<synchronous>, transform_indices = @transform_3, window_bounds = array<i64: 32, 64>}, {pipeline_mode = #tpu.pipeline_mode<synchronous>, transform_indices = @transform_4, window_bounds = array<i64: 64, 32>}, {pipeline_mode = #tpu.pipeline_mode<synchronous>, transform_indices = @transform_5, window_bounds = array<i64: 32, 32>}, {pipeline_mode = #tpu.pipeline_mode<synchronous>, transform_indices = @transform_6, window_bounds = array<i64: 32, 128>}, {pipeline_mode = #tpu.pipeline_mode<synchronous>, transform_indices = @transform_7, window_bounds = array<i64: 10, 128>}, {transform_indices = @transform_8, window_bounds = array<i64: 1, 8, 128>}]} {
    %c0 = arith.constant 0 : index
    %c0_0 = arith.constant 0 : index
    %c0_1 = arith.constant 0 : index
    %0 = vector.load %arg2[%c0, %c0_0, %c0_1] : memref<1x8x32xf32, #tpu.memory_space<vmem>>, vector<1x8x32xf32>
    %1 = vector.shape_cast %0 : vector<1x8x32xf32> to vector<8x32xf32>
    %c0_2 = arith.constant 0 : index
    %c0_3 = arith.constant 0 : index
    %2 = vector.load %arg9[%c0_2, %c0_3] : memref<10x128xf32, #tpu.memory_space<vmem>>, vector<10x128xf32>
    %3 = vector.extract_strided_slice %2 {offsets = [0, 0], sizes = [1, 96], strides = [1, 1]} : vector<10x128xf32> to vector<1x96xf32>
    %4 = vector.extract_strided_slice %2 {offsets = [1, 0], sizes = [1, 32], strides = [1, 1]} : vector<10x128xf32> to vector<1x32xf32>
    %5 = vector.extract_strided_slice %2 {offsets = [2, 0], sizes = [1, 32], strides = [1, 1]} : vector<10x128xf32> to vector<1x32xf32>
    %6 = vector.extract_strided_slice %2 {offsets = [3, 0], sizes = [1, 32], strides = [1, 1]} : vector<10x128xf32> to vector<1x32xf32>
    %7 = vector.extract_strided_slice %2 {offsets = [4, 0], sizes = [1, 64], strides = [1, 1]} : vector<10x128xf32> to vector<1x64xf32>
    %8 = vector.extract_strided_slice %2 {offsets = [5, 0], sizes = [1, 32], strides = [1, 1]} : vector<10x128xf32> to vector<1x32xf32>
    %9 = vector.extract_strided_slice %2 {offsets = [6, 0], sizes = [1, 32], strides = [1, 1]} : vector<10x128xf32> to vector<1x32xf32>
    %10 = vector.extract_strided_slice %2 {offsets = [7, 0], sizes = [1, 32], strides = [1, 1]} : vector<10x128xf32> to vector<1x32xf32>
    %11 = vector.extract_strided_slice %2 {offsets = [8, 0], sizes = [1, 32], strides = [1, 1]} : vector<10x128xf32> to vector<1x32xf32>
    %12 = vector.extract_strided_slice %2 {offsets = [9, 0], sizes = [1, 128], strides = [1, 1]} : vector<10x128xf32> to vector<1x128xf32>
    %13 = arith.truncf %1 : vector<8x32xf32> to vector<8x32xbf16>
    %c0_4 = arith.constant 0 : index
    %c0_5 = arith.constant 0 : index
    %14 = vector.load %arg3[%c0_4, %c0_5] : memref<32x96xbf16, #tpu.memory_space<vmem>>, vector<32x96xbf16>
    %cst = arith.constant dense<0.000000e+00> : vector<8x96xf32>
    %15 = tpu.matmul %13, %14, %cst {dimension_numbers = #tpu.dot_dimension_numbers<[1], [0], [0], [1], [0, 0, 1, 1], [], []>} : vector<8x32xbf16>, vector<32x96xbf16>, vector<8x96xf32> -> vector<8x96xf32>
    %16 = vector.broadcast %3 : vector<1x96xf32> to vector<8x96xf32>
    %17 = arith.addf %15, %16 : vector<8x96xf32>
    %18 = vector.extract_strided_slice %17 {offsets = [0, 0], sizes = [8, 32], strides = [1, 1]} : vector<8x96xf32> to vector<8x32xf32>
    %19 = vector.extract_strided_slice %17 {offsets = [0, 32], sizes = [8, 32], strides = [1, 1]} : vector<8x96xf32> to vector<8x32xf32>
    %20 = vector.extract_strided_slice %17 {offsets = [0, 64], sizes = [8, 32], strides = [1, 1]} : vector<8x96xf32> to vector<8x32xf32>
    %21 = arith.index_cast %arg0 : i32 to index
    %22 = memref.load %arg1[%21] : memref<2xi32, #tpu.memory_space<smem>>
    %23 = tpu.iota {dimensions = array<i32: 1>} : vector<8x8xi32>
    %24 = vector.broadcast %22 : i32 to vector<8x8xi32>
    %25 = arith.cmpi slt, %23, %24 : vector<8x8xi32>
    %cst_6 = arith.constant 0.000000e+00 : f32
    %cst_7 = arith.constant -1.000000e+09 : f32
    %26 = vector.broadcast %cst_6 : f32 to vector<8x8xf32>
    %27 = vector.broadcast %cst_7 : f32 to vector<8x8xf32>
    %28 = arith.select %25, %26, %27 : vector<8x8xi1>, vector<8x8xf32>
    %29 = vector.extract_strided_slice %18 {offsets = [0, 0], sizes = [8, 16], strides = [1, 1]} : vector<8x32xf32> to vector<8x16xf32>
    %30 = arith.truncf %29 : vector<8x16xf32> to vector<8x16xbf16>
    %31 = vector.extract_strided_slice %19 {offsets = [0, 0], sizes = [8, 16], strides = [1, 1]} : vector<8x32xf32> to vector<8x16xf32>
    %32 = arith.truncf %31 : vector<8x16xf32> to vector<8x16xbf16>
    %33 = vector.extract_strided_slice %20 {offsets = [0, 0], sizes = [8, 16], strides = [1, 1]} : vector<8x32xf32> to vector<8x16xf32>
    %34 = arith.truncf %33 : vector<8x16xf32> to vector<8x16xbf16>
    %cst_8 = arith.constant dense<0.000000e+00> : vector<8x8xf32>
    %35 = tpu.matmul %30, %32, %cst_8 {dimension_numbers = #tpu.dot_dimension_numbers<[1], [1], [0], [0], [0, 0, 1, 0], [], []>} : vector<8x16xbf16>, vector<8x16xbf16>, vector<8x8xf32> -> vector<8x8xf32>
    %36 = arith.addf %35, %28 : vector<8x8xf32>
    %cst_9 = arith.constant dense<0xFF800000> : vector<8xf32>
    %37 = vector.multi_reduction <maximumf>, %36, %cst_9 [1] : vector<8x8xf32> to vector<8xf32>
    %38 = vector.shape_cast %37 : vector<8xf32> to vector<8x1xf32>
    %39 = vector.broadcast %38 : vector<8x1xf32> to vector<8x8xf32>
    %40 = arith.subf %36, %39 : vector<8x8xf32>
    %41 = math.exp %40 : vector<8x8xf32>
    %cst_10 = arith.constant dense<0.000000e+00> : vector<8xf32>
    %42 = vector.multi_reduction <add>, %41, %cst_10 [1] : vector<8x8xf32> to vector<8xf32>
    %43 = vector.shape_cast %42 : vector<8xf32> to vector<8x1xf32>
    %44 = tpu.reciprocal %43 {approx = true} : vector<8x1xf32> -> vector<8x1xf32>
    %45 = vector.broadcast %44 : vector<8x1xf32> to vector<8x8xf32>
    %46 = arith.mulf %41, %45 : vector<8x8xf32>
    %47 = arith.truncf %46 : vector<8x8xf32> to vector<8x8xbf16>
    %cst_11 = arith.constant dense<0.000000e+00> : vector<8x16xf32>
    %48 = tpu.matmul %47, %34, %cst_11 {dimension_numbers = #tpu.dot_dimension_numbers<[1], [0], [0], [1], [0, 0, 1, 1], [], []>} : vector<8x8xbf16>, vector<8x16xbf16>, vector<8x16xf32> -> vector<8x16xf32>
    %c0_12 = arith.constant 0 : index
    %c0_13 = arith.constant 0 : index
    %49 = vector.load %arg11[%c0_12, %c0_13] : memref<8x32xf32, #tpu.memory_space<vmem>>, vector<8x16xf32>
    tpu.vector_store %arg11[%c0_12, %c0_13], %48 {strides = array<i32>} : memref<8x32xf32, #tpu.memory_space<vmem>>, vector<8x16xf32>,
    %50 = vector.extract_strided_slice %18 {offsets = [0, 16], sizes = [8, 16], strides = [1, 1]} : vector<8x32xf32> to vector<8x16xf32>
    %51 = arith.truncf %50 : vector<8x16xf32> to vector<8x16xbf16>
    %52 = vector.extract_strided_slice %19 {offsets = [0, 16], sizes = [8, 16], strides = [1, 1]} : vector<8x32xf32> to vector<8x16xf32>
    %53 = arith.truncf %52 : vector<8x16xf32> to vector<8x16xbf16>
    %54 = vector.extract_strided_slice %20 {offsets = [0, 16], sizes = [8, 16], strides = [1, 1]} : vector<8x32xf32> to vector<8x16xf32>
    %55 = arith.truncf %54 : vector<8x16xf32> to vector<8x16xbf16>
    %cst_14 = arith.constant dense<0.000000e+00> : vector<8x8xf32>
    %56 = tpu.matmul %51, %53, %cst_14 {dimension_numbers = #tpu.dot_dimension_numbers<[1], [1], [0], [0], [0, 0, 1, 0], [], []>} : vector<8x16xbf16>, vector<8x16xbf16>, vector<8x8xf32> -> vector<8x8xf32>
    %57 = arith.addf %56, %28 : vector<8x8xf32>
    %cst_15 = arith.constant dense<0xFF800000> : vector<8xf32>
    %58 = vector.multi_reduction <maximumf>, %57, %cst_15 [1] : vector<8x8xf32> to vector<8xf32>
    %59 = vector.shape_cast %58 : vector<8xf32> to vector<8x1xf32>
    %60 = vector.broadcast %59 : vector<8x1xf32> to vector<8x8xf32>
    %61 = arith.subf %57, %60 : vector<8x8xf32>
    %62 = math.exp %61 : vector<8x8xf32>
    %cst_16 = arith.constant dense<0.000000e+00> : vector<8xf32>
    %63 = vector.multi_reduction <add>, %62, %cst_16 [1] : vector<8x8xf32> to vector<8xf32>
    %64 = vector.shape_cast %63 : vector<8xf32> to vector<8x1xf32>
    %65 = tpu.reciprocal %64 {approx = true} : vector<8x1xf32> -> vector<8x1xf32>
    %66 = vector.broadcast %65 : vector<8x1xf32> to vector<8x8xf32>
    %67 = arith.mulf %62, %66 : vector<8x8xf32>
    %68 = arith.truncf %67 : vector<8x8xf32> to vector<8x8xbf16>
    %cst_17 = arith.constant dense<0.000000e+00> : vector<8x16xf32>
    %69 = tpu.matmul %68, %55, %cst_17 {dimension_numbers = #tpu.dot_dimension_numbers<[1], [0], [0], [1], [0, 0, 1, 1], [], []>} : vector<8x8xbf16>, vector<8x16xbf16>, vector<8x16xf32> -> vector<8x16xf32>
    %c0_18 = arith.constant 0 : index
    %c16 = arith.constant 16 : index
    %70 = vector.load %arg11[%c0_18, %c16] : memref<8x32xf32, #tpu.memory_space<vmem>>, vector<8x16xf32>
    tpu.vector_store %arg11[%c0_18, %c16], %69 {strides = array<i32>} : memref<8x32xf32, #tpu.memory_space<vmem>>, vector<8x16xf32>,
    %c0_19 = arith.constant 0 : index
    %c0_20 = arith.constant 0 : index
    %71 = vector.load %arg11[%c0_19, %c0_20] : memref<8x32xf32, #tpu.memory_space<vmem>>, vector<8x32xf32>
    %72 = arith.truncf %71 : vector<8x32xf32> to vector<8x32xbf16>
    %c0_21 = arith.constant 0 : index
    %c0_22 = arith.constant 0 : index
    %73 = vector.load %arg4[%c0_21, %c0_22] : memref<32x32xbf16, #tpu.memory_space<vmem>>, vector<32x32xbf16>
    %cst_23 = arith.constant dense<0.000000e+00> : vector<8x32xf32>
    %74 = tpu.matmul %72, %73, %cst_23 {dimension_numbers = #tpu.dot_dimension_numbers<[1], [0], [0], [1], [0, 0, 1, 1], [], []>} : vector<8x32xbf16>, vector<32x32xbf16>, vector<8x32xf32> -> vector<8x32xf32>
    %75 = vector.broadcast %4 : vector<1x32xf32> to vector<8x32xf32>
    %76 = arith.addf %74, %75 : vector<8x32xf32>
    %77 = arith.addf %1, %76 : vector<8x32xf32>
    %cst_24 = arith.constant dense<0.000000e+00> : vector<8xf32>
    %78 = vector.multi_reduction <add>, %77, %cst_24 [1] : vector<8x32xf32> to vector<8xf32>
    %79 = vector.shape_cast %78 : vector<8xf32> to vector<8x1xf32>
    %cst_25 = arith.constant 3.200000e+01 : f32
    %80 = vector.broadcast %cst_25 : f32 to vector<8x1xf32>
    %81 = arith.divf %79, %80 : vector<8x1xf32>
    %82 = vector.broadcast %81 : vector<8x1xf32> to vector<8x32xf32>
    %83 = arith.subf %77, %82 : vector<8x32xf32>
    %84 = arith.mulf %83, %83 : vector<8x32xf32>
    %cst_26 = arith.constant dense<0.000000e+00> : vector<8xf32>
    %85 = vector.multi_reduction <add>, %84, %cst_26 [1] : vector<8x32xf32> to vector<8xf32>
    %86 = vector.shape_cast %85 : vector<8xf32> to vector<8x1xf32>
    %cst_27 = arith.constant 3.200000e+01 : f32
    %87 = vector.broadcast %cst_27 : f32 to vector<8x1xf32>
    %88 = arith.divf %86, %87 : vector<8x1xf32>
    %89 = vector.broadcast %81 : vector<8x1xf32> to vector<8x32xf32>
    %90 = arith.subf %77, %89 : vector<8x32xf32>
    %cst_28 = arith.constant 9.99999996E-13 : f32
    %91 = vector.broadcast %cst_28 : f32 to vector<8x1xf32>
    %92 = arith.addf %88, %91 : vector<8x1xf32>
    %93 = math.rsqrt %92 : vector<8x1xf32>
    %94 = vector.broadcast %93 : vector<8x1xf32> to vector<8x32xf32>
    %95 = arith.mulf %90, %94 : vector<8x32xf32>
    %96 = vector.broadcast %5 : vector<1x32xf32> to vector<8x32xf32>
    %97 = arith.mulf %95, %96 : vector<8x32xf32>
    %98 = vector.broadcast %6 : vector<1x32xf32> to vector<8x32xf32>
    %99 = arith.addf %97, %98 : vector<8x32xf32>
    %100 = arith.truncf %99 : vector<8x32xf32> to vector<8x32xbf16>
    %c0_29 = arith.constant 0 : index
    %c0_30 = arith.constant 0 : index
    %101 = vector.load %arg5[%c0_29, %c0_30] : memref<32x64xbf16, #tpu.memory_space<vmem>>, vector<32x64xbf16>
    %cst_31 = arith.constant dense<0.000000e+00> : vector<8x64xf32>
    %102 = tpu.matmul %100, %101, %cst_31 {dimension_numbers = #tpu.dot_dimension_numbers<[1], [0], [0], [1], [0, 0, 1, 1], [], []>} : vector<8x32xbf16>, vector<32x64xbf16>, vector<8x64xf32> -> vector<8x64xf32>
    %103 = vector.broadcast %7 : vector<1x64xf32> to vector<8x64xf32>
    %104 = arith.addf %102, %103 : vector<8x64xf32>
    %105 = arith.mulf %104, %104 : vector<8x64xf32>
    %106 = arith.mulf %104, %105 : vector<8x64xf32>
    %cst_32 = arith.constant 4.471500e-02 : f32
    %107 = vector.broadcast %cst_32 : f32 to vector<8x64xf32>
    %108 = arith.mulf %107, %106 : vector<8x64xf32>
    %109 = arith.addf %104, %108 : vector<8x64xf32>
    %cst_33 = arith.constant 0.797884583 : f32
    %110 = vector.broadcast %cst_33 : f32 to vector<8x64xf32>
    %111 = arith.mulf %110, %109 : vector<8x64xf32>
    %112 = math.tanh %111 : vector<8x64xf32>
    %cst_34 = arith.constant 1.000000e+00 : f32
    %113 = vector.broadcast %cst_34 : f32 to vector<8x64xf32>
    %114 = arith.addf %113, %112 : vector<8x64xf32>
    %cst_35 = arith.constant 5.000000e-01 : f32
    %115 = vector.broadcast %cst_35 : f32 to vector<8x64xf32>
    %116 = arith.mulf %115, %114 : vector<8x64xf32>
    %117 = arith.mulf %104, %116 : vector<8x64xf32>
    %118 = arith.truncf %117 : vector<8x64xf32> to vector<8x64xbf16>
    %c0_36 = arith.constant 0 : index
    %c0_37 = arith.constant 0 : index
    %119 = vector.load %arg6[%c0_36, %c0_37] : memref<64x32xbf16, #tpu.memory_space<vmem>>, vector<64x32xbf16>
    %cst_38 = arith.constant dense<0.000000e+00> : vector<8x32xf32>
    %120 = tpu.matmul %118, %119, %cst_38 {dimension_numbers = #tpu.dot_dimension_numbers<[1], [0], [0], [1], [0, 0, 1, 1], [], []>} : vector<8x64xbf16>, vector<64x32xbf16>, vector<8x32xf32> -> vector<8x32xf32>
    %121 = vector.broadcast %8 : vector<1x32xf32> to vector<8x32xf32>
    %122 = arith.addf %120, %121 : vector<8x32xf32>
    %123 = arith.addf %99, %122 : vector<8x32xf32>
    %cst_39 = arith.constant dense<0.000000e+00> : vector<8xf32>
    %124 = vector.multi_reduction <add>, %123, %cst_39 [1] : vector<8x32xf32> to vector<8xf32>
    %125 = vector.shape_cast %124 : vector<8xf32> to vector<8x1xf32>
    %cst_40 = arith.constant 3.200000e+01 : f32
    %126 = vector.broadcast %cst_40 : f32 to vector<8x1xf32>
    %127 = arith.divf %125, %126 : vector<8x1xf32>
    %128 = vector.broadcast %127 : vector<8x1xf32> to vector<8x32xf32>
    %129 = arith.subf %123, %128 : vector<8x32xf32>
    %130 = arith.mulf %129, %129 : vector<8x32xf32>
    %cst_41 = arith.constant dense<0.000000e+00> : vector<8xf32>
    %131 = vector.multi_reduction <add>, %130, %cst_41 [1] : vector<8x32xf32> to vector<8xf32>
    %132 = vector.shape_cast %131 : vector<8xf32> to vector<8x1xf32>
    %cst_42 = arith.constant 3.200000e+01 : f32
    %133 = vector.broadcast %cst_42 : f32 to vector<8x1xf32>
    %134 = arith.divf %132, %133 : vector<8x1xf32>
    %135 = vector.broadcast %127 : vector<8x1xf32> to vector<8x32xf32>
    %136 = arith.subf %123, %135 : vector<8x32xf32>
    %cst_43 = arith.constant 9.99999996E-13 : f32
    %137 = vector.broadcast %cst_43 : f32 to vector<8x1xf32>
    %138 = arith.addf %134, %137 : vector<8x1xf32>
    %139 = math.rsqrt %138 : vector<8x1xf32>
    %140 = vector.broadcast %139 : vector<8x1xf32> to vector<8x32xf32>
    %141 = arith.mulf %136, %140 : vector<8x32xf32>
    %142 = vector.broadcast %9 : vector<1x32xf32> to vector<8x32xf32>
    %143 = arith.mulf %141, %142 : vector<8x32xf32>
    %144 = vector.broadcast %10 : vector<1x32xf32> to vector<8x32xf32>
    %145 = arith.addf %143, %144 : vector<8x32xf32>
    %146 = arith.truncf %145 : vector<8x32xf32> to vector<8x32xbf16>
    %c0_44 = arith.constant 0 : index
    %c0_45 = arith.constant 0 : index
    %147 = vector.load %arg7[%c0_44, %c0_45] : memref<32x32xbf16, #tpu.memory_space<vmem>>, vector<32x32xbf16>
    %cst_46 = arith.constant dense<0.000000e+00> : vector<8x32xf32>
    %148 = tpu.matmul %146, %147, %cst_46 {dimension_numbers = #tpu.dot_dimension_numbers<[1], [0], [0], [1], [0, 0, 1, 1], [], []>} : vector<8x32xbf16>, vector<32x32xbf16>, vector<8x32xf32> -> vector<8x32xf32>
    %149 = vector.broadcast %11 : vector<1x32xf32> to vector<8x32xf32>
    %150 = arith.addf %148, %149 : vector<8x32xf32>
    %151 = math.tanh %150 : vector<8x32xf32>
    %152 = arith.truncf %151 : vector<8x32xf32> to vector<8x32xbf16>
    %c0_47 = arith.constant 0 : index
    %c0_48 = arith.constant 0 : index
    %153 = vector.load %arg8[%c0_47, %c0_48] : memref<32x128xbf16, #tpu.memory_space<vmem>>, vector<32x128xbf16>
    %cst_49 = arith.constant dense<0.000000e+00> : vector<8x128xf32>
    %154 = tpu.matmul %152, %153, %cst_49 {dimension_numbers = #tpu.dot_dimension_numbers<[1], [0], [0], [1], [0, 0, 1, 1], [], []>} : vector<8x32xbf16>, vector<32x128xbf16>, vector<8x128xf32> -> vector<8x128xf32>
    %155 = vector.broadcast %12 : vector<1x128xf32> to vector<8x128xf32>
    %156 = arith.addf %154, %155 : vector<8x128xf32>
    %c0_50 = arith.constant 0 : index
    %c0_51 = arith.constant 0 : index
    %c0_52 = arith.constant 0 : index
    %157 = vector.load %arg10[%c0_50, %c0_51, %c0_52] : memref<1x8x128xf32, #tpu.memory_space<vmem>>, vector<1x8x128xf32>
    %158 = vector.shape_cast %157 : vector<1x8x128xf32> to vector<8x128xf32>
    %159 = vector.shape_cast %156 : vector<8x128xf32> to vector<1x8x128xf32>
    tpu.vector_store %arg10[%c0_50, %c0_51, %c0_52], %159 {strides = array<i32>} : memref<1x8x128xf32, #tpu.memory_space<vmem>>, vector<1x8x128xf32>,
    return
  }
  func.func @transform_0(%arg0: i32, %arg1: memref<2xi32, #tpu.memory_space<smem>>) -> (i32, i32, i32) {
    %c0_i32 = arith.constant 0 : i32
    %c0_i32_0 = arith.constant 0 : i32
    %c0_i32_1 = arith.constant 0 : i32
    return %arg0, %c0_i32, %c0_i32_0 : i32, i32, i32
  }
  func.func @transform_1(%arg0: i32, %arg1: memref<2xi32, #tpu.memory_space<smem>>) -> (i32, i32) {
    %c0_i32 = arith.constant 0 : i32
    %c0_i32_0 = arith.constant 0 : i32
    %c0_i32_1 = arith.constant 0 : i32
    return %c0_i32, %c0_i32_0 : i32, i32
  }
  func.func @transform_2(%arg0: i32, %arg1: memref<2xi32, #tpu.memory_space<smem>>) -> (i32, i32) {
    %c0_i32 = arith.constant 0 : i32
    %c0_i32_0 = arith.constant 0 : i32
    %c0_i32_1 = arith.constant 0 : i32
    return %c0_i32, %c0_i32_0 : i32, i32
  }
  func.func @transform_3(%arg0: i32, %arg1: memref<2xi32, #tpu.memory_space<smem>>) -> (i32, i32) {
    %c0_i32 = arith.constant 0 : i32
    %c0_i32_0 = arith.constant 0 : i32
    %c0_i32_1 = arith.constant 0 : i32
    return %c0_i32, %c0_i32_0 : i32, i32
  }
  func.func @transform_4(%arg0: i32, %arg1: memref<2xi32, #tpu.memory_space<smem>>) -> (i32, i32) {
    %c0_i32 = arith.constant 0 : i32
    %c0_i32_0 = arith.constant 0 : i32
    %c0_i32_1 = arith.constant 0 : i32
    return %c0_i32, %c0_i32_0 : i32, i32
  }
  func.func @transform_5(%arg0: i32, %arg1: memref<2xi32, #tpu.memory_space<smem>>) -> (i32, i32) {
    %c0_i32 = arith.constant 0 : i32
    %c0_i32_0 = arith.constant 0 : i32
    %c0_i32_1 = arith.constant 0 : i32
    return %c0_i32, %c0_i32_0 : i32, i32
  }
  func.func @transform_6(%arg0: i32, %arg1: memref<2xi32, #tpu.memory_space<smem>>) -> (i32, i32) {
    %c0_i32 = arith.constant 0 : i32
    %c0_i32_0 = arith.constant 0 : i32
    %c0_i32_1 = arith.constant 0 : i32
    return %c0_i32, %c0_i32_0 : i32, i32
  }
  func.func @transform_7(%arg0: i32, %arg1: memref<2xi32, #tpu.memory_space<smem>>) -> (i32, i32) {
    %c0_i32 = arith.constant 0 : i32
    %c0_i32_0 = arith.constant 0 : i32
    %c0_i32_1 = arith.constant 0 : i32
    return %c0_i32, %c0_i32_0 : i32, i32
  }
  func.func @transform_8(%arg0: i32, %arg1: memref<2xi32, #tpu.memory_space<smem>>) -> (i32, i32, i32) {
    %c0_i32 = arith.constant 0 : i32
    %c0_i32_0 = arith.constant 0 : i32
    %c0_i32_1 = arith.constant 0 : i32
    return %arg0, %c0_i32, %c0_i32_0 : i32, i32, i32
  }
}

</mosaic_0001>

<bundles_post_ra>
// kernel: bert_classifier_forward.1
= control target key start
LH: loop header
LB: loop body
LE: loop exit
PB: predicated region body
PF: predicated region fallthrough
CT: control target
= control target key end

     0   :  { %s936_s12 = smov [#allocation4]   ;;  %s1116_s0 = inlined_call_operand.vmem [shape: s32[2], index: 0, kind: input, shape index: {}]   ;;  %s1117_s1 = inlined_call_operand.vmem [shape: f32[2,8,32], index: 1, kind: input, shape index: {}]   ;;  %s1118_s2 = inlined_call_operand.vmem [shape: bf16[32,96], index: 2, kind: input, shape index: {}]   ;;  %s1119_s3 = inlined_call_operand.vmem [shape: bf16[32,32], index: 3, kind: input, shape index: {}]   ;;  %s1120_s4 = inlined_call_operand.vmem [shape: bf16[32,64], index: 4, kind: input, shape index: {}]   ;;  %s1121_s5 = inlined_call_operand.vmem [shape: bf16[64,32], index: 5, kind: input, shape index: {}]   ;;  %s1122_s6 = inlined_call_operand.vmem [shape: bf16[32,32], index: 6, kind: input, shape index: {}]   ;;  %s1123_s7 = inlined_call_operand.vmem [shape: bf16[32,128], index: 7, kind: input, shape index: {}]   ;;  %s1124_s8 = inlined_call_operand.vmem [shape: f32[10,128], index: 8, kind: input, shape index: {}]   ;;  %s1125_s9 = inlined_call_operand.vmem [shape: f32[2,8,128], index: 9, kind: output, shape index: {}]  }
   0x1   :  { %s15_s11 = sshll.u32 %s1116_s0, 4  ;;  %s16_s11 = int_to_ptr.vmem [resolvable:$true] %s15_s11 }
   0x2   :  { %18 = dma.vmem_to_smem %s16_s11, 16, %s936_s12, [#allocation3] }
   0x3   :  { %930 = dma.done.wait [#allocation3], 16 }
   0x4   :  { %931 = vsyncadd [#allocation3], 4294967280 }
   0x5   :  { %21 = sfence }
   0x6   :  { %s998_s13 = smov 0  }
   0x7 LB: > { %s1004_s14 = sadd.s32 4294967295, %s934_s13   ;;  %p794_p0 = scmp.ge.s32.totalorder %s934_s13, 1  ;;  %s934_s13 = sphi %s998_s13, %s27_s13  }
   0x8   : > { %p270_p1 = scmp.lt.s32.totalorder %s934_s13, 3 }
   0xa   : > { %p271_p2 = pnand %p794_p0, %p270_p1 }
   0xb   : > { %p302_p3 = scmp.lt.s32.totalorder (!%p271_p2), %s1004_s14, 1  ;;  %s937_s25 = smov (!%p271_p2), 112  }
   0xc   : > { %274 = sbr.rel (%p271_p2) target bundleno = 2147 (0x863), region = 52  ;;  %s938_s26 = smov (!%p271_p2), 96  }
   0xd   : > { %s939_s27 = smov (!%p271_p2), 80   ;;  %s940_s28 = smov (!%p271_p2), 64  }
   0xe   : > { %s941_s29 = smov (!%p271_p2), 48   ;;  %s349_s30 = sld [smem:[#allocation4 + %s1004_s14]] (!%p271_p2) }
   0xf   : > { %s943_s12 = smov (!%p271_p2), 16  }
  0x11   : > { %v866_v0 = vld [vmem:[%s1118_s2 + $0x8] sm:$0xff]  ;;  %v865_v1 = vld [vmem:[%s1118_s2] sm:$0xff]  ;;  %s1016_s18 = scalar_select %p302_p3, %s1004_s14, 1  ;;  %vm332_vm0 = vcmask 261120   ;;  %vm359_vm1 = vcmask 130048   ;;  %vm397_vm2 = vcmask 1043456   ;;  %v350_v19 = vlaneseq }
  0x12   : > { %342 = vmatpush.bf16.msra.mxu0 %v866_v0  ;;  %v1032_v4 = vld [vmem:[%s1124_s8] sm:$0xff]  ;;  %v942_v22 = vmov -1e+09   ;;  %vm379_vm4 = vcmask 64512   ;;  %v868_v50 = vld [vmem:[%s1119_s3 + $0x8] sm:$0xff]  ;;  %vm475_vm5 = vcmask 261248  }
  0x13   : > { %s795_s19 = sshll.u32 %s1016_s18, 3  ;;  %v319_v5 = vperm.slane %v1032_v4, 0  ;;  %v351_v20 = vand.u32 127, %v350_v19  ;;  %v867_v55 = vld [vmem:[%s1119_s3] sm:$0xff]  ;;  %v483_v59 = vperm.slane %v1032_v4, 1  ;;  %vm623_vm10 = vcmask 523264  }
  0x14   : > { %s305_s22 = scalar_lea.vmem %s1117_s1, %s795_s19  ;;  %v352_v21 = vstv %s349_s30 }
  0x15   : > { %v1024_v2 = vld [vmem:[%s305_s22] sm:$0xff]  ;;  %vm353_vm3 = vcmp.lt.s32.totalorder %v351_v20, %v352_v21  ;;  %s309_s22 = scalar_lea.vmem %s1125_s9, %s795_s19 }
  0x16   : > { %343 = vmatpush.bf16.msra.mxu0 %v865_v1  ;;  %v314_v3 = vpack.c.bf16 %v1024_v2, %v1024_v2  ;;  %v354_v23 = vsel %vm353_vm3, 0.0, %v942_v22  ;;  %v944_v1 = vmov 32.0  }
  0x19   : > { %805 = vmatmul.msk.bf16.vlgmr.msra.gmra.mxu0 %vm332_vm0, %v314_v3 }
  0x1a   : > { %505 = vmatpush.bf16.msrb.mxu0 %v868_v50  ;;  %v598_v50 = vperm.slane %v1032_v4, 5 }
  0x1e   : > { %506 = vmatpush.bf16.msrb.mxu0 %v867_v55 }
  0x96   : > { %v345_v6 = vpop.f32.mrf.mxu0 }
  0x97   : > { %v346_v7 = vadd.f32 %v345_v6, %v319_v5 }
  0x99   : > { %v355_v8 = vpack.c.bf16 %v346_v7, %v346_v7 }
  0x9b   : > { %415 = vrot.lane.b32.xlu1 %v355_v8, %s937_s25  ;;  %357 = vrot.lane.b32.xlu0 %v355_v8, %s938_s26 }
  0x9e   : > { %v347_v9 = vpop.f32.mrf.mxu0 }
  0xa3   : > { %417 = vrot.lane.b32.xlu0 %v355_v8, %s939_s27 }
  0xab   : > { %392 = vrot.lane.b32.xlu0 %v355_v8, %s940_s28 }
  0xb3   : > { %450 = vrot.lane.b32.xlu0 %v355_v8, %s941_s29 }
 0x10d   : > { %v358_v10 = vpop.permute.xlu0 %357  ;;  %v416_v14 = vpop.permute.xlu1 %415 }
 0x10e   : > { %v364_v11 = vsel %vm359_vm1, %v358_v10, 0 }
 0x10f   : > { %373 = vmatpush.bf16.xpose.msra.mxu1 %v364_v11 }
 0x115   : > { %v418_v12 = vpop.permute.xlu0 %417 }
 0x116   : > { %806 = vmatmul.msk.bf16.vlgmr.msra.gmra.mxu1 %vm359_vm1, %v355_v8  ;;  %v423_v13 = vsel %vm359_vm1, %v418_v12, 0 }
 0x117   : > { %432 = vmatpush.bf16.xpose.msra.mxu3 %v423_v13 }
 0x11d   : > { %v393_v15 = vpop.permute.xlu0 %392 }
 0x11e   : > { %808 = vmatmul.msk.bf16.vlgmr.msra.gmra.mxu3 %vm359_vm1, %v416_v14  ;;  %v399_v16 = vsel %vm397_vm2, %v393_v15, 0  ;;  %v870_v14 = vld [vmem:[%s1120_s4 + $0x8] sm:$0xff]  ;;  %v869_v15 = vld [vmem:[%s1120_s4] sm:$0xff] }
 0x11f   : > { %408 = vmatpush.bf16.msra.mxu2 %v399_v16  ;;  %573 = vmatpush.bf16.msrb.mxu1 %v870_v14  ;;  %v665_v14 = vperm.slane %v1032_v4, 7 }
 0x123   : > { %574 = vmatpush.bf16.msrb.mxu1 %v869_v15 }
 0x125   : > { %v451_v17 = vpop.permute.xlu0 %450 }
 0x126   : > { %v456_v18 = vsel %vm397_vm2, %v451_v17, 0 }
 0x127   : > { %465 = vmatpush.bf16.msrb.mxu2 %v456_v18 }
 0x193   : > { %v375_v24 = vpop.f32.mrf.mxu1 }
 0x194   : > { %v376_v25 = vadd.f32 %v375_v24, %v354_v23 }
 0x196   : > { %v380_v26 = vsel %vm379_vm4, %v376_v25, -inf }
 0x197   : > { %381 = vmax.xlane.f32.xlu1 %v380_v26 }
 0x19b   : > { %v377_v27 = vpop.f32.mrf.mxu1 }
 0x1a1   : > { %v434_v28 = vpop.f32.mrf.mxu3 }
 0x1a2   : > { %v435_v29 = vadd.f32 %v434_v28, %v354_v23  ;;  %v544_v28 = vperm.slane %v1032_v4, 3 }
 0x1a4   : > { %v438_v30 = vsel %vm379_vm4, %v435_v29, -inf }
 0x1a5   : > { %439 = vmax.xlane.f32.xlu2 %v438_v30 }
 0x1a9   : > { %v436_v31 = vpop.f32.mrf.mxu3 }
 0x20a   : > { %v382_v32 = vpop.xlane.xlu1 %381 }
 0x20b   : > { %v383_v33 = vsub.f32 %v376_v25, %v382_v32  ;;  %v542_v25 = vperm.slane %v1032_v4, 2  ;;  %v874_v32 = vld [vmem:[%s1121_s5 + $0x18] sm:$0xff] }
 0x20c   : > { %631 = vmatpush.bf16.msrb.mxu3 %v874_v32 }
 0x20d   : > { %v384_v34 = vmul.f32 1.442695, %v383_v33  ;;  %v873_v33 = vld [vmem:[%s1121_s5 + $0x10] sm:$0xff] }
 0x20f   : > { %896 = vpow2.f32 %v384_v34  ;;  %v872_v34 = vld [vmem:[%s1121_s5 + $0x8] sm:$0xff] }
 0x210   : > { %632 = vmatpush.bf16.msrb.mxu3 %v873_v33 }
 0x214   : > { %633 = vmatpush.bf16.msrb.mxu3 %v872_v34 }
 0x215   : > { %v897_v35 = vpop.eup %896 }
 0x216   : > { %v386_v36 = vsel %vm379_vm4, %v897_v35, 0.0 }
 0x217   : > { %387 = vadd.xlane.f32.xlu2 %v386_v36  ;;  %v551_v36 = vperm.slane %v1032_v4, 4 }
 0x218   : > { %v440_v37 = vpop.xlane.xlu2 %439 }
 0x219   : > { %v441_v38 = vsub.f32 %v435_v29, %v440_v37 }
 0x21b   : > { %v442_v39 = vmul.f32 1.442695, %v441_v38 }
 0x21d   : > { %898 = vpow2.f32 %v442_v39 }
 0x223   : > { %v899_v40 = vpop.eup %898 }
 0x224   : > { %v444_v41 = vsel %vm379_vm4, %v899_v40, 0.0 }
 0x225   : > { %445 = vadd.xlane.f32.xlu2 %v444_v41 }
 0x28a   : > { %v388_v42 = vpop.xlane.xlu2 %387 }
 0x28b   : > { %900 = vrcp.f32 %v388_v42 }
 0x291   : > { %v901_v43 = vpop.eup %900 }
 0x292   : > { %v390_v44 = vmul.f32 %v901_v43, %v897_v35  ;;  %v871_v35 = vld [vmem:[%s1121_s5] sm:$0xff] }
 0x293   : > { %634 = vmatpush.bf16.msrb.mxu3 %v871_v35 }
 0x294   : > { %v391_v45 = vpack.c.bf16 %v390_v44, %v390_v44 }
 0x296   : > { %807 = vmatmul.msk.bf16.vlgmr.msra.gmra.mxu2 %vm379_vm4, %v391_v45 }
 0x298   : > { %v446_v46 = vpop.xlane.xlu2 %445 }
 0x299   : > { %902 = vrcp.f32 %v446_v46 }
 0x29a   : > { %904 = vrcp.f32 %v944_v1 }
 0x29f   : > { %v903_v47 = vpop.eup %902 }
 0x2a0   : > { %v448_v48 = vmul.f32 %v903_v47, %v899_v40  ;;  %v905_v3 = vpop.eup %904 }
 0x2a1   : > { %v517_v5 = vmul.f32 32.0, %v905_v3  ;;  %vm521_vm6 = vweird.f32 %v905_v3 }
 0x2a2   : > { %v449_v49 = vpack.c.bf16 %v448_v48, %v448_v48 }
 0x2a3   : > { %v518_v6 = vsub.f32 1.0, %v517_v5 }
 0x2a5   : > { %v519_v7 = vmul.f32 %v905_v3, %v518_v6 }
 0x2a6   : > { %809 = vmatmul.msk.bf16.vlgmr.msrb.gmra.mxu2 %vm379_vm4, %v449_v49 }
 0x2a7   : > { %v520_v8 = vadd.f32 %v905_v3, %v519_v7 }
 0x2a9   : > { %v1057_v9 = vsel %vm521_vm6, %v905_v3, %v520_v8 }
 0x319   : > { %v410_v51 = vpop.f32.mrf.mxu2 }
 0x31a   : > { %414 = vst.msk [vmem:[#allocation2] sm:$0xff] %vm359_vm1, %v410_v51 }
 0x321   : > { %v412_v52 = vpop.f32.mrf.mxu2 }
 0x329   : > { %v467_v53 = vpop.f32.mrf.mxu2 }
 0x32a   : > { %472 = vrot.lane.b32.xlu2 %v467_v53, %s943_s12 }
 0x331   : > { %v469_v54 = vpop.f32.mrf.mxu2 }
 0x384   : > { %v473_v56 = vpop.permute.xlu2 %472 }
 0x385   : > { %476 = vst.msk [vmem:[#allocation2] sm:$0xff] %vm475_vm5, %v473_v56 }
 0x38c   : > { %v477_v57 = vld [vmem:[#allocation2] sm:$0xff] }
 0x38d   : > { %v478_v58 = vpack.c.bf16 %v477_v57, %v477_v57 }
 0x38f   : > { %818 = vmatmul.msk.bf16.vlgmr.msrb.gmra.mxu0 %vm332_vm0, %v478_v58 }
 0x40c   : > { %v508_v60 = vpop.f32.mrf.mxu0 }
 0x40d   : > { %v509_v61 = vadd.f32 %v508_v60, %v483_v59 }
 0x40f   : > { %v512_v62 = vadd.f32 %v509_v61, %v1024_v2  ;;  %v876_v61 = vld [vmem:[%s1122_s6 + $0x8] sm:$0xff] }
 0x410   : > { %694 = vmatpush.bf16.msra.mxu2 %v876_v61 }
 0x411   : > { %v513_v63 = vsel %vm332_vm0, %v512_v62, 0.0 }
 0x412   : > { %514 = vadd.xlane.f32.xlu0 %v513_v63  ;;  %v878_v63 = vld [vmem:[%s1123_s7 + $0x8] sm:$0xff] }
 0x413   : > { %729 = vmatpush.bf16.msra.mxu0 %v878_v63 }
 0x414   : > { %v510_v0 = vpop.f32.mrf.mxu0 }
 0x485   : > { %v515_v10 = vpop.xlane.xlu0 %514 }
 0x486   : > { %v523_v11 = vmul.f32 %v1057_v9, %v515_v10 }
 0x488   : > { %v524_v12 = vsub.f32 %v512_v62, %v523_v11  ;;  %v875_v62 = vld [vmem:[%s1122_s6] sm:$0xff] }
 0x489   : > { %695 = vmatpush.bf16.msra.mxu2 %v875_v62 }
 0x48a   : > { %v525_v13 = vmul.f32 %v524_v12, %v524_v12 }
 0x48c   : > { %v526_v2 = vsel %vm332_vm0, %v525_v13, 0.0 }
 0x48d   : > { %527 = vadd.xlane.f32.xlu2 %v526_v2 }
 0x500   : > { %v528_v16 = vpop.xlane.xlu2 %527 }
 0x501   : > { %v529_v17 = vmul.f32 %v528_v16, %v1057_v9 }
 0x503   : > { %v530_v18 = vadd.f32 1e-12, %v529_v17  ;;  %v877_v17 = vld [vmem:[%s1123_s7] sm:$0xff] }
 0x504   : > { %730 = vmatpush.bf16.msra.mxu0 %v877_v17 }
 0x505   : > { %906 = vrsqrt.f32 %v530_v18  ;;  %vm537_vm8 = vweird.f32 %v530_v18 }
 0x50b   : > { %v907_v19 = vpop.eup %906 }
 0x50c   : > { %v532_v20 = vmul.f32 %v907_v19, %v530_v18  ;;  %vm538_vm7 = vweird.f32 %v907_v19  ;;  %v313_v18 = vld [vmem:[%s1124_s8 + $0x8] sm:$0x3] }
 0x50d   : > { %vm539_vm9 = vmor %vm537_vm8, %vm538_vm7 }
 0x50e   : > { %v533_v21 = vmul.f32 %v907_v19, %v532_v20 }
 0x510   : > { %v534_v22 = vmul.f32 0.5, %v533_v21 }
 0x512   : > { %v535_v23 = vsub.f32 1.5, %v534_v22 }
 0x514   : > { %v536_v24 = vmul.f32 %v907_v19, %v535_v23 }
 0x516   : > { %v540_v26 = vsel %vm539_vm9, %v907_v19, %v536_v24  ;;  %v672_v19 = vperm.slane %v313_v18, 0  ;;  %v707_v24 = vperm.slane %v313_v18, 1 }
 0x517   : > { %v541_v27 = vmul.f32 %v540_v26, %v524_v12  ;;  %v663_v12 = vperm.slane %v1032_v4, 6 }
 0x519   : > { %v543_v29 = vmul.f32 %v542_v25, %v541_v27 }
 0x51b   : > { %v545_v30 = vadd.f32 %v544_v28, %v543_v29 }
 0x51d   : > { %v546_v31 = vpack.c.bf16 %v545_v30, %v545_v30 }
 0x51f   : > { %827 = vmatmul.msk.bf16.vlgmr.msrb.gmra.mxu1 %vm332_vm0, %v546_v31 }
 0x59c   : > { %v576_v37 = vpop.f32.mrf.mxu1 }
 0x59d   : > { %v577_v38 = vadd.f32 %v576_v37, %v551_v36 }
 0x59f   : > { %v580_v39 = vmul.f32 %v577_v38, %v577_v38 }
 0x5a1   : > { %v581_v40 = vmul.f32 %v580_v39, %v577_v38 }
 0x5a3   : > { %v582_v41 = vmul.f32 0.044715, %v581_v40 }
 0x5a4   : > { %v578_v42 = vpop.f32.mrf.mxu1 }
 0x5a5   : > { %v583_v43 = vadd.f32 %v582_v41, %v577_v38 }
 0x5a7   : > { %v584_v44 = vmul.f32 0.7978846, %v583_v43 }
 0x5a9   : > { %908 = vtanh.f32 %v584_v44 }
 0x5af   : > { %v909_v45 = vpop.eup %908 }
 0x5b0   : > { %v586_v46 = vadd.f32 1.0, %v909_v45 }
 0x5b2   : > { %v587_v47 = vmul.f32 0.5, %v586_v46 }
 0x5b4   : > { %v588_v48 = vmul.f32 %v587_v47, %v577_v38 }
 0x5b6   : > { %v589_v49 = vpack.c.bf16 %v588_v48, %v588_v48 }
 0x5b8   : > { %844 = vmatmul.msk.bf16.vlgmr.msrb.gmra.mxu3 %vm623_vm10, %v589_v49 }
 0x63b   : > { %v636_v51 = vpop.f32.mrf.mxu3 }
 0x63c   : > { %v637_v52 = vadd.f32 %v636_v51, %v598_v50 }
 0x63e   : > { %v640_v53 = vadd.f32 %v637_v52, %v545_v30 }
 0x640   : > { %v641_v54 = vsel %vm332_vm0, %v640_v53, 0.0 }
 0x641   : > { %642 = vadd.xlane.f32.xlu1 %v641_v54 }
 0x643   : > { %v638_v55 = vpop.f32.mrf.mxu3 }
 0x6b4   : > { %v643_v56 = vpop.xlane.xlu1 %642 }
 0x6b5   : > { %v644_v57 = vmul.f32 %v643_v56, %v1057_v9 }
 0x6b7   : > { %v645_v58 = vsub.f32 %v640_v53, %v644_v57 }
 0x6b9   : > { %v646_v59 = vmul.f32 %v645_v58, %v645_v58 }
 0x6bb   : > { %v647_v60 = vsel %vm332_vm0, %v646_v59, 0.0 }
 0x6bc   : > { %648 = vadd.xlane.f32.xlu1 %v647_v60 }
 0x72f   : > { %v649_v0 = vpop.xlane.xlu1 %648 }
 0x730   : > { %v650_v1 = vmul.f32 %v649_v0, %v1057_v9 }
 0x732   : > { %v651_v3 = vadd.f32 1e-12, %v650_v1 }
 0x734   : > { %910 = vrsqrt.f32 %v651_v3  ;;  %vm658_vm12 = vweird.f32 %v651_v3 }
 0x73a   : > { %v911_v5 = vpop.eup %910 }
 0x73b   : > { %v653_v6 = vmul.f32 %v911_v5, %v651_v3  ;;  %vm659_vm11 = vweird.f32 %v911_v5 }
 0x73c   : > { %vm660_vm13 = vmor %vm658_vm12, %vm659_vm11 }
 0x73d   : > { %v654_v7 = vmul.f32 %v911_v5, %v653_v6 }
 0x73f   : > { %v655_v8 = vmul.f32 0.5, %v654_v7 }
 0x741   : > { %v656_v10 = vsub.f32 1.5, %v655_v8 }
 0x743   : > { %v657_v11 = vmul.f32 %v911_v5, %v656_v10 }
 0x745   : > { %v661_v13 = vsel %vm660_vm13, %v911_v5, %v657_v11 }
 0x746   : > { %v662_v2 = vmul.f32 %v661_v13, %v645_v58 }
 0x748   : > { %v664_v15 = vmul.f32 %v663_v12, %v662_v2 }
 0x74a   : > { %v666_v9 = vadd.f32 %v665_v14, %v664_v15 }
 0x74c   : > { %v667_v16 = vpack.c.bf16 %v666_v9, %v666_v9 }
 0x74e   : > { %853 = vmatmul.msk.bf16.vlgmr.msra.gmra.mxu2 %vm332_vm0, %v667_v16 }
 0x7d1   : > { %v697_v20 = vpop.f32.mrf.mxu2 }
 0x7d2   : > { %v698_v21 = vadd.f32 %v697_v20, %v672_v19 }
 0x7d4   : > { %912 = vtanh.f32 %v698_v21 }
 0x7d9   : > { %v699_v4 = vpop.f32.mrf.mxu2 }
 0x7da   : > { %v913_v22 = vpop.eup %912 }
 0x7db   : > { %v702_v23 = vpack.c.bf16 %v913_v22, %v913_v22 }
 0x7dd   : > { %862 = vmatmul.msk.bf16.vlgmr.msra.gmra.mxu0 %vm332_vm0, %v702_v23 }
 0x85a   : > { %v732_v25 = vpop.f32.mrf.mxu0 }
 0x85b   : > { %v733_v26 = vadd.f32 %v732_v25, %v707_v24 }
 0x85d   : > { %736 = vst [vmem:[%s309_s22] sm:$0xff] %v733_v26 }
 0x862   : > { %v734_v27 = vpop.f32.mrf.mxu0 }
 0x863 PF: > { %s27_s13 = sadd.s32 1, %s934_s13  }
 0x864   : > { %p24_p4 = scmp.ge.s32.totalorder %s27_s13, 4  }
 0x866   :  { %26 = sbr.rel (!%p24_p4) target bundleno = 7 (0x7), region = 82 }

</bundles_post_ra>
